<compile_context>
chip_gen: v5e
topology: v5e:2x2
jax: 0.10.0
libtpu: 0.0.40
codegen_flags: <defaults>
</compile_context>

<pallas_src>
import jax
import jax.numpy as jnp
from jax.experimental import pallas as pl
from jax.experimental.pallas import tpu as pltpu


# ---------------------------------------------------------------------------
# Helpers
# ---------------------------------------------------------------------------
def _round_up(x: int, m: int) -> int:
    return ((x + m - 1) // m) * m


def _vmem_limit_bytes(*tile_byte_counts: int) -> int:
    # 2x for double-buffered pipelining of every tile, plus headroom.
    need = 2 * sum(tile_byte_counts) + (2 << 20)
    return int(min(max(need, 4 << 20), 64 << 20))


# ---------------------------------------------------------------------------
# Kernels
# ---------------------------------------------------------------------------
def _fused_linear_logsoftmax_kernel(x_ref, w_ref, b_ref, o_ref):
    """Single fused linear (x @ W + b) followed by log_softmax along dim=1.

    The class axis of W / b / out is padded to a multiple of 128 lanes; padded
    bias lanes hold -1e30 so they contribute nothing to max / sum reductions.
    """
    x = x_ref[...].astype(jnp.float32)                                 # (TB, D_in)
    z = jnp.dot(x, w_ref[...], preferred_element_type=jnp.float32) + b_ref[...]
    m = jnp.max(z, axis=1, keepdims=True)                              # lane reduce -> XLU
    s = z - m
    lse = jnp.log(jnp.sum(jnp.exp(s), axis=1, keepdims=True))          # exp/log -> EUP
    o_ref[...] = (s - lse).astype(o_ref.dtype)


def _logsoftmax_kernel(x_ref, o_ref):
    """Pass-through branch: log_softmax(X, dim=1)."""
    x = x_ref[...].astype(jnp.float32)
    m = jnp.max(x, axis=1, keepdims=True)
    s = x - m
    lse = jnp.log(jnp.sum(jnp.exp(s), axis=1, keepdims=True))
    o_ref[...] = (s - lse).astype(o_ref.dtype)


# ---------------------------------------------------------------------------
# Wrapper
# ---------------------------------------------------------------------------
class SCModelPallas:
    # Batch-tile size: large tiles (512-2048 rows) reach the HBM roofline; it is
    # clamped to the (padded) batch so tiny batches still compile.
    MAX_BATCH_TILE = 1024
    _NEG_PAD = -1e30  # padded-lane bias; vanishes under exp() in log_softmax

    def __init__(self, feature_vector_length, classes_PT, classes_SC, key):
        self.feature_vector_length = feature_vector_length
        self.classes_PT = classes_PT
        self.classes_SC = classes_SC

        d_in = feature_vector_length // 2
        d_hid = feature_vector_length // 4
        c = classes_SC

        k1, k2, k3, k4 = jax.random.split(key, 4)
        # PyTorch nn.Linear init: U(-1/sqrt(fan_in), 1/sqrt(fan_in)).
        # Weights stored as (in, out) = W^T so the kernel computes x @ W directly.
        lim1 = 1.0 / jnp.sqrt(jnp.float32(d_in))
        lim2 = 1.0 / jnp.sqrt(jnp.float32(d_hid))
        self.w1 = jax.random.uniform(k1, (d_in, d_hid), jnp.float32, -lim1, lim1)
        self.b1 = jax.random.uniform(k2, (1, d_hid), jnp.float32, -lim1, lim1)
        self.w2 = jax.random.uniform(k3, (d_hid, c), jnp.float32, -lim2, lim2)
        self.b2 = jax.random.uniform(k4, (1, c), jnp.float32, -lim2, lim2)

        # --- Algebraic fusion of the two bias-linears (no nonlinearity between) ---
        #   y = (x @ w1 + b1) @ w2 + b2 = x @ (w1 @ w2) + (b1 @ w2 + b2)
        w_fused = self.w1 @ self.w2                       # (D_in, C)
        b_fused = self.b1 @ self.w2 + self.b2             # (1, C)

        # --- Lane-dense padding of the class axis to a multiple of 128 ---
        c_pad = _round_up(max(c, 1), 128)
        self.c_pad = c_pad
        self.w_fused_pad = jnp.zeros((d_in, c_pad), jnp.float32).at[:, :c].set(w_fused)
        self.b_fused_pad = (
            jnp.full((1, c_pad), self._NEG_PAD, jnp.float32).at[:, :c].set(b_fused)
        )

    # -- branch 1: fused linear + log_softmax ------------------------------------
    def _layers_branch(self, x):
        B, d_in = x.shape
        c = self.classes_SC
        c_pad = self.c_pad

        tb = min(self.MAX_BATCH_TILE, _round_up(B, 8))
        b_pad = _round_up(B, tb)
        if b_pad != B:
            x = jnp.pad(x, ((0, b_pad - B), (0, 0)))
        grid = (b_pad // tb,)

        vmem_bytes = _vmem_limit_bytes(
            tb * d_in * 4,          # x tile
            tb * c_pad * 4,         # out tile
            d_in * c_pad * 4,       # fused weight
            c_pad * 4,              # fused bias
        )

        out = pl.pallas_call(
            _fused_linear_logsoftmax_kernel,
            out_shape=jax.ShapeDtypeStruct((b_pad, c_pad), jnp.float32),
            grid=grid,
            in_specs=[
                pl.BlockSpec((tb, d_in), lambda i: (i, 0)),      # batch-tiled input
                pl.BlockSpec((d_in, c_pad), lambda i: (0, 0)),   # resident fused weight
                pl.BlockSpec((1, c_pad), lambda i: (0, 0)),      # resident fused bias
            ],
            out_specs=pl.BlockSpec((tb, c_pad), lambda i: (i, 0)),
            compiler_params=pltpu.CompilerParams(
                dimension_semantics=("parallel",),
                vmem_limit_bytes=vmem_bytes,
            ),
            cost_estimate=pl.CostEstimate(
                flops=2 * b_pad * d_in * c_pad,
                transcendentals=b_pad * c_pad + b_pad,
                bytes_accessed=4 * (b_pad * d_in + d_in * c_pad + c_pad + b_pad * c_pad),
            ),
        )(x, self.w_fused_pad, self.b_fused_pad)

        # Slice away batch padding and the padded class lanes (cheap XLA slice).
        return out[:B, :c]

    # -- branch 2: pass-through log_softmax --------------------------------------
    def _passthrough_branch(self, x):
        B, d = x.shape
        tb = min(self.MAX_BATCH_TILE, _round_up(B, 8))
        b_pad = _round_up(B, tb)
        if b_pad != B:
            x = jnp.pad(x, ((0, b_pad - B), (0, 0)))
        grid = (b_pad // tb,)

        vmem_bytes = _vmem_limit_bytes(tb * d * 4, tb * d * 4)

        out = pl.pallas_call(
            _logsoftmax_kernel,
            out_shape=jax.ShapeDtypeStruct((b_pad, d), jnp.float32),
            grid=grid,
            in_specs=[pl.BlockSpec((tb, d), lambda i: (i, 0))],
            out_specs=pl.BlockSpec((tb, d), lambda i: (i, 0)),
            compiler_params=pltpu.CompilerParams(
                dimension_semantics=("parallel",),
                vmem_limit_bytes=vmem_bytes,
            ),
            cost_estimate=pl.CostEstimate(
                flops=3 * b_pad * d,
                transcendentals=b_pad * d + b_pad,
                bytes_accessed=4 * (2 * b_pad * d),
            ),
        )(x)
        return out[:B]

    def __call__(self, x):
        if self.feature_vector_length != self.classes_PT + self.classes_SC:
            return self._layers_branch(x)
        return self._passthrough_branch(x)


# ---------------------------------------------------------------------------
# Reference (plain JAX, unfused — matches PyTorch op order) for sanity checking
# ---------------------------------------------------------------------------
def _reference(model, x):
    if model.feature_vector_length != model.classes_PT + model.classes_SC:
        h = x @ model.w1 + model.b1
        z = h @ model.w2 + model.b2
    else:
        z = x
    return jax.nn.log_softmax(z, axis=1)


if __name__ == "__main__":
    key = jax.random.PRNGKey(0)
    k_param, k_x, k_param2, k_x2 = jax.random.split(key, 4)

    # --- Branch 1: fvl != classes_PT + classes_SC  ->  Linear/Linear/log_softmax ---
    #   feature_vector_length = 64 -> Linear(32 -> 16) -> Linear(16 -> 4)
    fvl, classes_PT, classes_SC = 64, 2, 4
    batch = 8
    model = SCModelPallas(fvl, classes_PT, classes_SC, k_param)
    x = jax.random.normal(k_x, (batch, fvl // 2), jnp.float32)

    out = jax.block_until_ready(model(x))
    ref = _reference(model, x)
    assert out.shape == (batch, classes_SC)
    assert jnp.allclose(out, ref, atol=1e-4, rtol=1e-4), "layers branch mismatch"
    assert jnp.allclose(jnp.sum(jnp.exp(out), axis=1), 1.0, atol=1e-5)

    # --- Branch 2: fvl == classes_PT + classes_SC  ->  pure log_softmax ---
    fvl2, classes_PT2, classes_SC2 = 6, 2, 4
    model2 = SCModelPallas(fvl2, classes_PT2, classes_SC2, k_param2)
    x2 = jax.random.normal(k_x2, (batch, 16), jnp.float32)

    out2 = jax.block_until_ready(model2(x2))
    ref2 = _reference(model2, x2)
    assert out2.shape == x2.shape
    assert jnp.allclose(out2, ref2, atol=1e-5, rtol=1e-5), "pass-through mismatch"
    assert jnp.allclose(jnp.sum(jnp.exp(out2), axis=1), 1.0, atol=1e-5)

    print("KERNEL_OK")
</pallas_src>

<mosaic_0001>
module attributes {stable_mosaic.version = 11 : i64} {
  func.func @_fused_linear_logsoftmax_kernel(%arg0: i32, %arg1: memref<8x32xf32, #tpu.memory_space<vmem>>, %arg2: memref<32x128xf32, #tpu.memory_space<vmem>>, %arg3: memref<1x128xf32, #tpu.memory_space<vmem>>, %arg4: memref<8x128xf32, #tpu.memory_space<vmem>>) attributes {dimension_semantics = [#tpu.dimension_semantics<parallel>], iteration_bounds = array<i64: 1>, scalar_prefetch = 0 : i64, scratch_operands = 0 : i64, tpu.core_type = #tpu.core_type<tc>, window_params = [{transform_indices = @transform_0, window_bounds = array<i64: 8, 32>}, {pipeline_mode = #tpu.pipeline_mode<synchronous>, transform_indices = @transform_1, window_bounds = array<i64: 32, 128>}, {pipeline_mode = #tpu.pipeline_mode<synchronous>, transform_indices = @transform_2, window_bounds = array<i64: 1, 128>}, {transform_indices = @transform_3, window_bounds = array<i64: 8, 128>}]} {
    %c0 = arith.constant 0 : index
    %c0_0 = arith.constant 0 : index
    %0 = vector.load %arg1[%c0, %c0_0] : memref<8x32xf32, #tpu.memory_space<vmem>>, vector<8x32xf32>
    %c0_1 = arith.constant 0 : index
    %c0_2 = arith.constant 0 : index
    %1 = vector.load %arg2[%c0_1, %c0_2] : memref<32x128xf32, #tpu.memory_space<vmem>>, vector<32x128xf32>
    %cst = arith.constant dense<0.000000e+00> : vector<8x128xf32>
    %2 = tpu.matmul %0, %1, %cst {dimension_numbers = #tpu.dot_dimension_numbers<[1], [0], [0], [1], [0, 0, 1, 1], [], []>} : vector<8x32xf32>, vector<32x128xf32>, vector<8x128xf32> -> vector<8x128xf32>
    %c0_3 = arith.constant 0 : index
    %c0_4 = arith.constant 0 : index
    %3 = vector.load %arg3[%c0_3, %c0_4] : memref<1x128xf32, #tpu.memory_space<vmem>>, vector<1x128xf32>
    %4 = vector.broadcast %3 : vector<1x128xf32> to vector<8x128xf32>
    %5 = arith.addf %2, %4 : vector<8x128xf32>
    %cst_5 = arith.constant dense<0xFF800000> : vector<8xf32>
    %6 = vector.multi_reduction <maximumf>, %5, %cst_5 [1] : vector<8x128xf32> to vector<8xf32>
    %7 = vector.shape_cast %6 : vector<8xf32> to vector<8x1xf32>
    %8 = vector.broadcast %7 : vector<8x1xf32> to vector<8x128xf32>
    %9 = arith.subf %5, %8 : vector<8x128xf32>
    %10 = math.exp %9 : vector<8x128xf32>
    %cst_6 = arith.constant dense<0.000000e+00> : vector<8xf32>
    %11 = vector.multi_reduction <add>, %10, %cst_6 [1] : vector<8x128xf32> to vector<8xf32>
    %12 = vector.shape_cast %11 : vector<8xf32> to vector<8x1xf32>
    %13 = math.log %12 : vector<8x1xf32>
    %14 = vector.broadcast %13 : vector<8x1xf32> to vector<8x128xf32>
    %15 = arith.subf %9, %14 : vector<8x128xf32>
    %c0_7 = arith.constant 0 : index
    %c0_8 = arith.constant 0 : index
    %16 = vector.load %arg4[%c0_7, %c0_8] : memref<8x128xf32, #tpu.memory_space<vmem>>, vector<8x128xf32>
    tpu.vector_store %arg4[%c0_7, %c0_8], %15 {strides = array<i32>} : memref<8x128xf32, #tpu.memory_space<vmem>>, vector<8x128xf32>,
    return
  }
  func.func @transform_0(%arg0: i32) -> (i32, i32) {
    %c0_i32 = arith.constant 0 : i32
    %c0_i32_0 = arith.constant 0 : i32
    return %arg0, %c0_i32 : i32, i32
  }
  func.func @transform_1(%arg0: i32) -> (i32, i32) {
    %c0_i32 = arith.constant 0 : i32
    %c0_i32_0 = arith.constant 0 : i32
    %c0_i32_1 = arith.constant 0 : i32
    return %c0_i32, %c0_i32_0 : i32, i32
  }
  func.func @transform_2(%arg0: i32) -> (i32, i32) {
    %c0_i32 = arith.constant 0 : i32
    %c0_i32_0 = arith.constant 0 : i32
    %c0_i32_1 = arith.constant 0 : i32
    return %c0_i32, %c0_i32_0 : i32, i32
  }
  func.func @transform_3(%arg0: i32) -> (i32, i32) {
    %c0_i32 = arith.constant 0 : i32
    %c0_i32_0 = arith.constant 0 : i32
    return %arg0, %c0_i32 : i32, i32
  }
}

</mosaic_0001>

<bundles_post_ra>
// kernel: tpu_custom_call.1
= control target key start
LH: loop header
LB: loop body
LE: loop exit
PB: predicated region body
PF: predicated region fallthrough
CT: control target
= control target key end

     0   :  { %8 = vsyncpa [#allocation3], 0  ;;  %s233_s0 = inlined_call_operand.hbm [shape: f32[8,32], index: 0, kind: input, shape index: {}]   ;;  %s234_s1 = inlined_call_operand.hbm [shape: f32[32,128], index: 1, kind: input, shape index: {}]   ;;  %s235_s2 = inlined_call_operand.vmem [shape: f32[1,128], index: 2, kind: input, shape index: {}]   ;;  %s236_s3 = inlined_call_operand.hbm [shape: f32[8,128], index: 3, kind: output, shape index: {}]  }
   0x1   :  { %9 = vsyncpa [#allocation6], 0 }
   0x2   :  { %10 = vsyncpa [#allocation4], 0  ;;  %s16_s14 = sshll.u32 %s233_s0, 4  ;;  %s196_s15 = smov [#allocation2]   ;;  %s17_s14 = int_to_ptr.hbm [resolvable:$true] %s16_s14 }
   0x3   :  { %s18_s16 = sshll.u32 %s196_s15, 4  ;;  %s26_s19 = sshll.u32 %s234_s1, 4  ;;  %s19_s16 = int_to_ptr.vmem [resolvable:$true] %s18_s16  ;;  %s27_s19 = int_to_ptr.hbm [resolvable:$true] %s26_s19 }
   0x4   :  { %21 = dma.hbm_to_vmem [thread:$0]  %s17_s14, 128, %s19_s16, [#allocation3]  }
   0x5   :  { %s197_s20 = smov [#allocation5]   ;;  %s198_s22 = smov 128  }
   0x6   :  { %s28_s21 = sshll.u32 %s197_s20, 4  ;;  %s199_s23 = smov 8   ;;  %s29_s21 = int_to_ptr.vmem [resolvable:$true] %s28_s21 }
   0x7   :  { %34 = dma.hbm_to_vmem [thread:$0]  %s27_s19, 512, %s29_s21, [#allocation6], %s198_s22, %s198_s22, %s199_s23  }
   0x8   :  { %190 = dma.done.wait [#allocation3], 128  }
   0x9   :  { %191 = vsyncadd [#allocation3], 4294967168 }
   0xa   :  { %192 = dma.done.wait [#allocation6], 512  }
   0xb   :  { %193 = vsyncadd [#allocation6], 4294966784  ;;  %v49_v0 = vld [vmem:[#allocation5 + $0x18] sm:$0xff]  ;;  %v48_v1 = vld [vmem:[#allocation5 + $0x10] sm:$0xff]  ;;  %vm54_vm0 = vcmask 261120   ;;  %s200_s24 = smov [#allocation7]  }
   0xc   :  { %70 = vmatpush.msra.mxu0 %v49_v0  ;;  %v47_v2 = vld [vmem:[#allocation5 + $0x8] sm:$0xff]  ;;  %v46_v3 = vld [vmem:[#allocation5] sm:$0xff]  ;;  %v45_v4 = vld [vmem:[#allocation2] sm:$0xff]  ;;  %s94_s25 = sshll.u32 %s200_s24, 4  ;;  %s96_s28 = sshll.u32 %s236_s3, 4  ;;  %s95_s25 = int_to_ptr.vmem [resolvable:$true] %s94_s25  ;;  %s97_s28 = int_to_ptr.hbm [resolvable:$true] %s96_s28 }
   0xd   :  { %v113_v5 = vld [vmem:[%s235_s2] ss:$0 sm:$0xff] }
   0xe   :  { %71 = vmatpush.msra.mxu0 %v48_v1 }
  0x10   :  { %72 = vmatpush.msra.mxu0 %v47_v2 }
  0x12   :  { %73 = vmatpush.msra.mxu0 %v46_v3 }
  0x13   :  { %107 = vmatmul.msk.f32.vlgmr.msra.gmra.mxu0 %vm54_vm0, %v45_v4 }
  0x90   :  { %v75_v6 = vpop.f32.mrf.mxu0 }
  0x91   :  { %v76_v7 = vadd.f32 %v113_v5, %v75_v6 }
  0x93   :  { %78 = vmax.xlane.f32.xlu0 %v76_v7 }
 0x106   :  { %v79_v8 = vpop.xlane.xlu0 %78 }
 0x107   :  { %v80_v9 = vsub.f32 %v76_v7, %v79_v8 }
 0x109   :  { %v81_v10 = vmul.f32 1.442695, %v80_v9 }
 0x10b   :  { %114 = vpow2.f32 %v81_v10 }
 0x111   :  { %v115_v11 = vpop.eup %114 }
 0x112   :  { %83 = vadd.xlane.f32.xlu0 %v115_v11 }
 0x185   :  { %v84_v12 = vpop.xlane.xlu0 %83 }
 0x186   :  { %116 = vlog2.f32 %v84_v12 }
 0x18c   :  { %v117_v13 = vpop.eup %116 }
 0x18d   :  { %v86_v14 = vmul.f32 0.6931472, %v117_v13 }
 0x18f   :  { %v87_v15 = vsub.f32 %v80_v9, %v86_v14 }
 0x191   :  { %88 = vst [vmem:[#allocation7] sm:$0xff] %v87_v15 }
 0x192   :  { %99 = dma.vmem_to_hbm [thread:$0]  %s95_s25, 128, %s97_s28, [#allocation4]  }
 0x193   :  { %194 = dma.done.wait [#allocation4], 128  }
 0x194   :  { %195 = vsyncadd [#allocation4], 4294967168 }
 0x195   :  { %104 = vsyncpa [#allocation3], 1 }
 0x196   :  { %105 = vsyncpa [#allocation6], 1 }
 0x197   :  { %106 = vsyncpa [#allocation4], 1 }

</bundles_post_ra>
